<compile_context>
chip_gen: v7x
topology: tpu7x:2x2x1
jax: 0.10.0
libtpu: 0.0.40
codegen_flags: <defaults>
</compile_context>

<pallas_src>
import jax
import jax.numpy as jnp
from jax.experimental import pallas as pl
from jax.experimental.pallas import tpu as pltpu


def _round_up(x: int, m: int) -> int:
    return ((x + m - 1) // m) * m


def _ising_entropy_kernel(h_ref, j_ref, ts_ref, o_ref):
    # h_ref : (BB, 1, N)    j_ref : (BB, N, N)    ts_ref : (BB, N, tT)
    # o_ref : (1, BB, tT)
    h = h_ref[...]
    J = j_ref[...]
    ts = ts_ref[...]

    # Batched MXU matmul: (BB,N,N) @ (BB,N,tT) -> (BB,N,tT), f32 accumulation.
    jt = jnp.einsum("bij,bjt->bit", J, ts, preferred_element_type=jnp.float32)

    # Linear (field) term on the MXU as well: (BB,1,N) @ (BB,N,tT) -> (BB,1,tT).
    h_term = jnp.einsum("bkn,bnt->bkt", h, ts, preferred_element_type=jnp.float32)

    # Quadratic term: reduce over the node axis; fold 0.5 onto the reduced row.
    quad = jnp.sum(ts.astype(jnp.float32) * jt, axis=1, keepdims=True)  # (BB,1,tT)

    out = h_term + 0.5 * quad                                           # (BB,1,tT)
    o_ref[0] = out[:, 0, :].astype(o_ref.dtype)                         # (BB,tT) dense store


def ising_entropy_of_ts(
    h,
    J,
    time_series,
    *,
    ts_compute_dtype=None,          # e.g. jnp.bfloat16 (exact for +/-1 spins)
    j_compute_dtype=None,           # e.g. jnp.bfloat16 (loses ~3 decimal digits on J)
    vmem_limit_bytes=48 * 1024 * 1024,   # safe on v7x (64 MiB) and v5e/v6e (128 MiB)
    block_budget_bytes=28 * 1024 * 1024, # per-step resident budget used to pick BB
):
    """h: (M,S,N), J: (M,S,N,N), time_series: (M,S,N,T) -> (M,S,T)."""
    M, S, N = h.shape
    T = time_series.shape[-1]
    B = M * S
    out_dtype = time_series.dtype

    # ---- flatten batch dims and (optionally) cast the heavy HBM streams ----
    h_b = h.reshape(B, 1, N)                      # lane dim = N (good layout)
    J_b = J.reshape(B, N, N)
    ts_b = time_series.reshape(B, N, T)
    if ts_compute_dtype is not None:
        ts_b = ts_b.astype(ts_compute_dtype)
    if j_compute_dtype is not None:
        J_b = J_b.astype(j_compute_dtype)

    # ---- pad node / time axes for clean vreg tiles (zero padding is exact) ----
    any_bf16 = any(
        jnp.dtype(a.dtype).itemsize == 2 for a in (ts_b, J_b)
    )
    n_align = 16 if any_bf16 else 8
    n_pad = _round_up(N, n_align)
    t_padded = _round_up(T, 128)
    if t_padded <= 2048:
        t_tile = t_padded                         # single T tile
    else:
        t_tile = 2048                             # tile T; J stays resident across t steps
        t_padded = _round_up(t_padded, t_tile)

    if n_pad != N:
        h_b = jnp.pad(h_b, ((0, 0), (0, 0), (0, n_pad - N)))
        J_b = jnp.pad(J_b, ((0, 0), (0, n_pad - N), (0, n_pad - N)))
        ts_b = jnp.pad(ts_b, ((0, 0), (0, n_pad - N), (0, 0)))
    if t_padded != T:
        ts_b = jnp.pad(ts_b, ((0, 0), (0, 0), (0, t_padded - T)))

    # ---- choose the per-step batch BB from a VMEM budget ----
    out_itemsize = jnp.dtype(out_dtype).itemsize
    per_entry_io = (
        n_pad * n_pad * jnp.dtype(J_b.dtype).itemsize
        + n_pad * t_tile * jnp.dtype(ts_b.dtype).itemsize
        + n_pad * jnp.dtype(h_b.dtype).itemsize
        + t_tile * out_itemsize
    )
    # f32 intermediates inside the kernel (J@ts product + elementwise temp).
    per_entry_scratch = 2 * n_pad * t_tile * 4
    per_entry = 2 * per_entry_io + per_entry_scratch      # x2: double-buffered blocks
    bb = max(1, int(block_budget_bytes // per_entry))
    if bb >= B:
        bb = B
    elif bb >= 8:
        bb = (bb // 8) * 8                                 # full-sublane output tiles
    else:
        bb = min(8, B)  # TODO(synk): very large N*T would additionally need K-tiling of J
    b_pad = _round_up(B, bb)
    if b_pad != B:
        h_b = jnp.pad(h_b, ((0, b_pad - B), (0, 0), (0, 0)))
        J_b = jnp.pad(J_b, ((0, b_pad - B), (0, 0), (0, 0)))
        ts_b = jnp.pad(ts_b, ((0, b_pad - B), (0, 0), (0, 0)))

    n_bblocks = b_pad // bb
    n_tblocks = t_padded // t_tile

    out = pl.pallas_call(
        _ising_entropy_kernel,
        out_shape=jax.ShapeDtypeStruct((n_bblocks, bb, t_padded), out_dtype),
        grid_spec=pltpu.PrefetchScalarGridSpec(
            num_scalar_prefetch=0,
            grid=(n_bblocks, n_tblocks),
            in_specs=[
                pl.BlockSpec((bb, 1, n_pad), lambda b, t: (b, 0, 0)),
                pl.BlockSpec((bb, n_pad, n_pad), lambda b, t: (b, 0, 0)),  # J resident over t
                pl.BlockSpec((bb, n_pad, t_tile), lambda b, t: (b, 0, t)),
            ],
            out_specs=pl.BlockSpec((1, bb, t_tile), lambda b, t: (b, 0, t)),
        ),
        compiler_params=pltpu.CompilerParams(
            dimension_semantics=("parallel", "arbitrary"),
            vmem_limit_bytes=vmem_limit_bytes,
        ),
    )(h_b, J_b, ts_b)

    out = out.reshape(b_pad, t_padded)[:B, :T]
    return out.reshape(M, S, T)


def ising_entropy_reference(h, J, time_series):
    # Pure-JAX reference mirroring the PyTorch semantics exactly (f32 end to end).
    jt = jnp.einsum("msij,msjt->msit", J, time_series)
    return jnp.sum(time_series * (h[..., None] + 0.5 * jt), axis=-2)


if __name__ == "__main__":
    # Small, forward-consistent shapes.
    M, S, N, T = 2, 2, 16, 128  # models_per_subject, num_subjects, num_nodes, num_steps
    key = jax.random.PRNGKey(0)
    k_beta, k_J, k_h, k_s, k_ts = jax.random.split(key, 5)

    # Deterministic synthetic parameters matching __init__ shapes.
    beta = jax.random.uniform(k_beta, (M, S), dtype=jnp.float32)          # unused in forward
    J = jax.random.normal(k_J, (M, S, N, N), dtype=jnp.float32) * 0.1
    J = 0.5 * (J + jnp.swapaxes(J, -1, -2))                               # symmetric couplings
    h = jax.random.normal(k_h, (M, S, N), dtype=jnp.float32) * 0.1
    s = jnp.sign(jax.random.normal(k_s, (M, S, N), dtype=jnp.float32))    # unused in forward

    # Input time series of +/-1 spins.
    time_series = jnp.sign(
        jax.random.normal(k_ts, (M, S, N, T), dtype=jnp.float32)
    ).astype(jnp.float32)

    # ts -> bf16 is exact for +/-1 spins (halves the dominant HBM stream); J stays f32
    # so results match the f32 reference to tight tolerance.
    out = ising_entropy_of_ts(h, J, time_series, ts_compute_dtype=jnp.bfloat16)
    out = jax.block_until_ready(out)

    ref = ising_entropy_reference(h, J, time_series)
    assert out.shape == (M, S, T)
    assert jnp.allclose(out, ref, atol=1e-4, rtol=1e-4), "mismatch vs reference"

    print("KERNEL_OK")
</pallas_src>

<mosaic_0001>
module attributes {stable_mosaic.version = 11 : i64} {
  func.func @_ising_entropy_kernel(%arg0: i32, %arg1: i32, %arg2: memref<4x1x16xf32, #tpu.memory_space<vmem>>, %arg3: memref<4x16x16xf32, #tpu.memory_space<vmem>>, %arg4: memref<4x16x128xbf16, #tpu.memory_space<vmem>>, %arg5: memref<1x4x128xf32, #tpu.memory_space<vmem>>) attributes {dimension_semantics = [#tpu.dimension_semantics<parallel>, #tpu.dimension_semantics<arbitrary>], iteration_bounds = array<i64: 1, 1>, scalar_prefetch = 0 : i64, scratch_operands = 0 : i64, tpu.core_type = #tpu.core_type<tc>, window_params = [{transform_indices = @transform_0, window_bounds = array<i64: 4, 1, 16>}, {transform_indices = @transform_1, window_bounds = array<i64: 4, 16, 16>}, {transform_indices = @transform_2, window_bounds = array<i64: 4, 16, 128>}, {transform_indices = @transform_3, window_bounds = array<i64: 1, 4, 128>}]} {
    %c0 = arith.constant 0 : index
    %c0_0 = arith.constant 0 : index
    %c0_1 = arith.constant 0 : index
    %0 = vector.load %arg2[%c0, %c0_0, %c0_1] : memref<4x1x16xf32, #tpu.memory_space<vmem>>, vector<4x1x16xf32>
    %c0_2 = arith.constant 0 : index
    %c0_3 = arith.constant 0 : index
    %c0_4 = arith.constant 0 : index
    %1 = vector.load %arg3[%c0_2, %c0_3, %c0_4] : memref<4x16x16xf32, #tpu.memory_space<vmem>>, vector<4x16x16xf32>
    %c0_5 = arith.constant 0 : index
    %c0_6 = arith.constant 0 : index
    %c0_7 = arith.constant 0 : index
    %2 = vector.load %arg4[%c0_5, %c0_6, %c0_7] : memref<4x16x128xbf16, #tpu.memory_space<vmem>>, vector<4x16x128xbf16>
    "tpu.trace_start"() <{level = 10 : i32, message = "bij,bjt->bit"}> : () -> ()
    %cst = arith.constant dense<0.000000e+00> : vector<4x16x128xf32>
    %3 = tpu.matmul %1, %2, %cst {dimension_numbers = #tpu.dot_dimension_numbers<[2], [1], [1], [2], [0, 0, 0, 1, 1, 2], [0], [0]>} : vector<4x16x16xf32>, vector<4x16x128xbf16>, vector<4x16x128xf32> -> vector<4x16x128xf32>
    "tpu.trace_stop"() : () -> ()
    "tpu.trace_start"() <{level = 10 : i32, message = "bkn,bnt->bkt"}> : () -> ()
    %cst_8 = arith.constant dense<0.000000e+00> : vector<4x1x128xf32>
    %4 = tpu.matmul %0, %2, %cst_8 {dimension_numbers = #tpu.dot_dimension_numbers<[2], [1], [1], [2], [0, 0, 0, 1, 1, 2], [0], [0]>} : vector<4x1x16xf32>, vector<4x16x128xbf16>, vector<4x1x128xf32> -> vector<4x1x128xf32>
    "tpu.trace_stop"() : () -> ()
    %5 = arith.extf %2 : vector<4x16x128xbf16> to vector<4x16x128xf32>
    %6 = arith.mulf %5, %3 : vector<4x16x128xf32>
    %cst_9 = arith.constant dense<0.000000e+00> : vector<4x128xf32>
    %7 = vector.multi_reduction <add>, %6, %cst_9 [1] : vector<4x16x128xf32> to vector<4x128xf32>
    %8 = vector.shape_cast %7 : vector<4x128xf32> to vector<4x1x128xf32>
    %cst_10 = arith.constant 5.000000e-01 : f32
    %9 = vector.broadcast %cst_10 : f32 to vector<4x1x128xf32>
    %10 = arith.mulf %9, %8 : vector<4x1x128xf32>
    %11 = arith.addf %4, %10 : vector<4x1x128xf32>
    %12 = vector.shape_cast %11 : vector<4x1x128xf32> to vector<4x128xf32>
    %c0_11 = arith.constant 0 : index
    %c0_12 = arith.constant 0 : index
    %c0_13 = arith.constant 0 : index
    %13 = vector.load %arg5[%c0_11, %c0_12, %c0_13] : memref<1x4x128xf32, #tpu.memory_space<vmem>>, vector<1x4x128xf32>
    %14 = vector.shape_cast %13 : vector<1x4x128xf32> to vector<4x128xf32>
    %15 = vector.shape_cast %12 : vector<4x128xf32> to vector<1x4x128xf32>
    tpu.vector_store %arg5[%c0_11, %c0_12, %c0_13], %15 {strides = array<i32>} : memref<1x4x128xf32, #tpu.memory_space<vmem>>, vector<1x4x128xf32>,
    return
  }
  func.func @transform_0(%arg0: i32, %arg1: i32) -> (i32, i32, i32) {
    %c0_i32 = arith.constant 0 : i32
    %c0_i32_0 = arith.constant 0 : i32
    %c0_i32_1 = arith.constant 0 : i32
    return %arg0, %c0_i32, %c0_i32_0 : i32, i32, i32
  }
  func.func @transform_1(%arg0: i32, %arg1: i32) -> (i32, i32, i32) {
    %c0_i32 = arith.constant 0 : i32
    %c0_i32_0 = arith.constant 0 : i32
    %c0_i32_1 = arith.constant 0 : i32
    return %arg0, %c0_i32, %c0_i32_0 : i32, i32, i32
  }
  func.func @transform_2(%arg0: i32, %arg1: i32) -> (i32, i32, i32) {
    %c0_i32 = arith.constant 0 : i32
    %c0_i32_0 = arith.constant 0 : i32
    return %arg0, %c0_i32, %arg1 : i32, i32, i32
  }
  func.func @transform_3(%arg0: i32, %arg1: i32) -> (i32, i32, i32) {
    %c0_i32 = arith.constant 0 : i32
    %c0_i32_0 = arith.constant 0 : i32
    return %arg0, %c0_i32, %arg1 : i32, i32, i32
  }
}

</mosaic_0001>

<bundles_post_ra>
// kernel: tpu_custom_call.1
= control target key start
LH: loop header
LB: loop body
LE: loop exit
PB: predicated region body
PF: predicated region fallthrough
CT: control target
= control target key end

     0   :  { %8 = vsyncpa [#allocation3], 0  ;;  %s851_s0 = inlined_call_operand.hbm [shape: f32[4,1,16], index: 0, kind: input, shape index: {}]   ;;  %s852_s1 = inlined_call_operand.hbm [shape: f32[4,16,16], index: 1, kind: input, shape index: {}]   ;;  %s853_s2 = inlined_call_operand.hbm [shape: bf16[4,16,128], index: 2, kind: input, shape index: {}]   ;;  %s854_s3 = inlined_call_operand.hbm [shape: f32[1,4,128], index: 3, kind: output, shape index: {}]  }
   0x1   :  { %9 = vsyncpa [#allocation6], 0 }
   0x2   :  { %10 = vsyncpa [#allocation4], 0  ;;  %s731_s12 = smov [#allocation5]   ;;  %s637_s16 = scalar_lea.hbm %s852_s1, 1024 }
   0x3   :  { %s28_s13 = sshll.u32 %s731_s12, 4  ;;  %p638_p0 = scmp.ne.s32.totalorder %s852_s1, %s637_s16  ;;  %s29_s13 = int_to_ptr.vmem [resolvable:$true] %s28_s13 }
   0x4   :  { %p641_p1 = scmp.lt.u32.totalorder %s637_s16, %s852_s1 }
   0x6   :  { %p643_p2 = pnand %p641_p1, %p638_p0 }
   0x8   :  { %646 = shalt.err (!%p643_p2)
}
   0x9   :  { %s647_s21 = scalar_lea.vmem %s29_s13, 1024  ;;  %p652_p4 = scmp.lt.s32.totalorder %s29_s13, %s29_s13 }
   0xa   :  { %p648_p3 = scmp.ne.s32.totalorder %s29_s13, %s647_s21  ;;  %p653_p5 = scmp.lt.s32.totalorder %s647_s21, %s647_s21 }
   0xc   :  { %p654_p6 = por %p653_p5, %p652_p4 }
   0xe   :  { %p655_p7 = pnand %p654_p6, %p648_p3 }
  0x10   :  { %658 = shalt.err (!%p655_p7)
}
  0x11   :  { %s732_s22 = smov 128   ;;  %s733_s23 = smov 8  }
  0x12   :  { %34 = dma.hbm_to_vmem [thread:$0]  %s852_s1, 1024, %s29_s13, [#allocation6], %s732_s22, %s732_s22, %s733_s23  }
  0x13   :  { %s734_s26 = smov [#allocation2]   ;;  %s659_s30 = scalar_lea.hbm %s851_s0, 64 }
  0x14   :  { %s16_s27 = sshll.u32 %s734_s26, 4  ;;  %p660_p8 = scmp.ne.s32.totalorder %s851_s0, %s659_s30  ;;  %s17_s27 = int_to_ptr.vmem [resolvable:$true] %s16_s27 }
  0x15   :  { %p663_p9 = scmp.lt.u32.totalorder %s659_s30, %s851_s0 }
  0x17   :  { %p665_p10 = pnand %p663_p9, %p660_p8 }
  0x19   :  { %668 = shalt.err (!%p665_p10)
}
  0x1a   :  { %s669_s8 = scalar_lea.vmem %s17_s27, 64  ;;  %p674_p12 = scmp.lt.s32.totalorder %s17_s27, %s17_s27 }
  0x1b   :  { %p670_p11 = scmp.ne.s32.totalorder %s17_s27, %s669_s8  ;;  %p675_p13 = scmp.lt.s32.totalorder %s669_s8, %s669_s8 }
  0x1d   :  { %p676_p0 = por %p675_p13, %p674_p12 }
  0x1f   :  { %p677_p1 = pnand %p676_p0, %p670_p11 }
  0x21   :  { %680 = shalt.err (!%p677_p1)
}
  0x22   :  { %s735_s1 = smov 16   ;;  %s736_s9 = smov 1  }
  0x23   :  { %22 = dma.hbm_to_vmem [thread:$0]  %s851_s0, 64, %s17_s27, [#allocation3], %s735_s1, %s735_s1, %s736_s9  }
  0x24   :  { %s737_s12 = smov [#allocation7]   ;;  %s681_s16 = scalar_lea.hbm %s853_s2, 512 }
  0x25   :  { %s40_s13 = sshll.u32 %s737_s12, 4  ;;  %p682_p2 = scmp.ne.s32.totalorder %s853_s2, %s681_s16  ;;  %s41_s13 = int_to_ptr.vmem [resolvable:$true] %s40_s13 }
  0x26   :  { %p685_p3 = scmp.lt.u32.totalorder %s681_s16, %s853_s2 }
  0x28   :  { %p687_p4 = pnand %p685_p3, %p682_p2 }
  0x2a   :  { %690 = shalt.err (!%p687_p4)
}
  0x2b   :  { %s691_s21 = scalar_lea.vmem %s41_s13, 512  ;;  %p696_p6 = scmp.lt.s32.totalorder %s41_s13, %s41_s13 }
  0x2c   :  { %p692_p5 = scmp.ne.s32.totalorder %s41_s13, %s691_s21  ;;  %p697_p7 = scmp.lt.s32.totalorder %s691_s21, %s691_s21 }
  0x2e   :  { %p698_p8 = por %p697_p7, %p696_p6 }
  0x30   :  { %p699_p9 = pnand %p698_p8, %p692_p5 }
  0x32   :  { %702 = shalt.err (!%p699_p9)
}
  0x33   :  { %s738_s0 = smov 64   ;;  %s739_s22 = smov 4  }
  0x34   :  { %46 = dma.hbm_to_vmem [thread:$0]  %s853_s2, 512, %s41_s13, [#allocation6], %s738_s0, %s738_s0, %s739_s22  }
  0x35   :  { %725 = dma.done.wait [#allocation3], 64  }
  0x36   :  { %726 = vsyncadd [#allocation3], 4294967232 }
  0x37   :  { %727 = dma.done.wait [#allocation6], 1536  }
  0x38   :  { %728 = vsyncadd [#allocation6], 4294965760  ;;  %vm83_vm0 = vcmask 130048   ;;  %v799_v0 = vld [vmem:[#allocation7] sm:$0xff]   ;;  %v801_v1 = vld [vmem:[#allocation7 + $0x8] sm:$0xff]   ;;  %v740_v12 = vmov 0.0  }
  0x39   :  { %v61_v2 = vld [vmem:[#allocation5] sm:$0xff]  ;;  %v63_v3 = vld [vmem:[#allocation5 + $0x10] sm:$0xff]  ;;  %v807_v5 = vld [vmem:[#allocation7 + $0x18] sm:$0xff]   ;;  %577 = vmatprep.subr.bf16.mxu0 %v799_v0  ;;  %582 = vmatprep.subr.bf16.mxu1 %v801_v1  ;;  %vm741_vm1 = vmmov 0   ;;  %v299_v17 = vunpack.c.h.bf16 %v799_v0  ;;  %v301_v18 = vunpack.c.h.bf16 %v801_v1  ;;  %v298_v19 = vunpack.c.l.bf16 %v799_v0  ;;  %s742_s2 = smov [#allocation8]  }
  0x3a   :  { %579 = vmatprep.mubr.msk.f32.mxu0 %vm83_vm0, %v61_v2  ;;  %584 = vmatprep.mubr.msk.f32.mxu1 %vm83_vm0, %v63_v3  ;;  %v805_v4 = vld [vmem:[#allocation7 + $0x10] sm:$0xff]   ;;  %v62_v6 = vld [vmem:[#allocation5 + $0x8] sm:$0xff]  ;;  %v64_v7 = vld [vmem:[#allocation5 + $0x18] sm:$0xff]  ;;  %v300_v20 = vunpack.c.l.bf16 %v801_v1  ;;  %v305_v28 = vunpack.c.h.bf16 %v807_v5  ;;  %v304_v32 = vunpack.c.l.bf16 %v807_v5  ;;  %vm515_vm2 = vcmask 1041409   ;;  %s531_s25 = sshll.u32 %s742_s2, 4  ;;  %s532_s25 = int_to_ptr.vmem [resolvable:$true] %s531_s25 }
  0x3b   :  { %578 = vmatpush3.bf16.msra.mxu0 %v799_v0  ;;  %583 = vmatpush3.bf16.msra.mxu1 %v801_v1  ;;  %v65_v8 = vld [vmem:[#allocation5 + $0x20] sm:$0xff]  ;;  %v67_v9 = vld [vmem:[#allocation5 + $0x30] sm:$0xff]  ;;  %v66_v10 = vld [vmem:[#allocation5 + $0x28] sm:$0xff]  ;;  %v303_v27 = vunpack.c.h.bf16 %v805_v4  ;;  %v302_v31 = vunpack.c.l.bf16 %v805_v4  ;;  %vm518_vm3 = vcmask 1042434   ;;  %vm521_vm4 = vcmask 1043459   ;;  %s703_s26 = scalar_lea.vmem %s532_s25, 64  ;;  %p708_p11 = scmp.lt.s32.totalorder %s532_s25, %s532_s25 }
  0x3c   :  { %587 = vmatprep.subr.bf16.mxu0 %v805_v4  ;;  %592 = vmatprep.subr.bf16.mxu1 %v807_v5  ;;  %v68_v11 = vld [vmem:[#allocation5 + $0x38] sm:$0xff]  ;;  %p704_p10 = scmp.ne.s32.totalorder %s532_s25, %s703_s26  ;;  %p709_p12 = scmp.lt.s32.totalorder %s703_s26, %s703_s26 }
  0x3d   :  { %v57_v13 = vld [vmem:[#allocation2] sm:$0x1]  ;;  %v58_v14 = vld [vmem:[#allocation2 + $0x1] sm:$0x1]  ;;  %v59_v15 = vld [vmem:[#allocation2 + $0x2] sm:$0x1] }
  0x3e   :  { %580 = vmatmul.mubr.msk.f32.vlgmr.msra.gmra.mrb[0].mxu0 %vm83_vm0, %v62_v6  ;;  %585 = vmatmul.mubr.msk.f32.vlgmr.msra.gmra.mrb[0].mxu1 %vm83_vm0, %v64_v7  ;;  %v60_v16 = vld [vmem:[#allocation2 + $0x3] sm:$0x1]  ;;  %p710_p13 = por %p709_p12, %p708_p11 }
  0x3f   :  { %588 = vmatpush3.bf16.msra.mxu0 %v805_v4  ;;  %593 = vmatpush3.bf16.msra.mxu1 %v807_v5 }
  0x40   :  { %589 = vmatprep.mubr.msk.f32.mxu0 %vm83_vm0, %v65_v8  ;;  %594 = vmatprep.mubr.msk.f32.mxu1 %vm83_vm0, %v67_v9  ;;  %p711_p0 = pnand %p710_p13, %p704_p10 }
  0x41   :  { %597 = vmatprep.subr.bf16.mxu0 %v740_v12  ;;  %602 = vmatprep.subr.bf16.mxu1 %v740_v12 }
  0x42   :  { %590 = vmatmul.mubr.msk.f32.vlgmr.msra.gmra.mrb[2].mxu0 %vm83_vm0, %v66_v10  ;;  %595 = vmatmul.mubr.msk.f32.vlgmr.msra.gmra.mrb[2].mxu1 %vm83_vm0, %v68_v11 }
  0x43   :  { %598 = vmatpush3.bf16.msra.mxu0 %v799_v0  ;;  %603 = vmatpush3.bf16.msra.mxu1 %v801_v1 }
  0x44   :  { %599 = vmatprep.mubr.msk.f32.mxu0 %vm741_vm1, %v740_v12  ;;  %604 = vmatprep.mubr.msk.f32.mxu1 %vm741_vm1, %v740_v12 }
  0x45   :  { %607 = vmatprep.subr.bf16.mxu0 %v740_v12  ;;  %612 = vmatprep.subr.bf16.mxu1 %v740_v12 }
  0x46   :  { %600 = vmatmul.mubr.msk.f32.vlgmr.msra.gmra.mrb[4].mxu0 %vm83_vm0, %v57_v13  ;;  %605 = vmatmul.mubr.msk.f32.vlgmr.msra.gmra.mrb[4].mxu1 %vm83_vm0, %v58_v14 }
  0x47   :  { %608 = vmatpush3.bf16.msra.mxu0 %v805_v4  ;;  %613 = vmatpush3.bf16.msra.mxu1 %v807_v5 }
  0x48   :  { %609 = vmatprep.mubr.msk.f32.mxu0 %vm741_vm1, %v740_v12  ;;  %614 = vmatprep.mubr.msk.f32.mxu1 %vm741_vm1, %v740_v12 }
  0x4a   :  { %610 = vmatmul.mubr.msk.f32.vlgmr.msra.gmra.mrb[6].mxu0 %vm83_vm0, %v59_v15  ;;  %615 = vmatmul.mubr.msk.f32.vlgmr.msra.gmra.mrb[6].mxu1 %vm83_vm0, %v60_v16 }
 0x111   :  { %v581_v21 = vpop.f32.mrb[0].mxu0  ;;  %v586_v22 = vpop.f32.mrb[0].mxu1 }
 0x112   :  { %v307_v23 = vmul.f32 %v581_v21, %v299_v17  ;;  %v309_v24 = vmul.f32 %v586_v22, %v301_v18  ;;  %v124_v25 = vpop.f32.mrb[1].mxu0  ;;  %v179_v26 = vpop.f32.mrb[1].mxu1 }
 0x113   :  { %v306_v29 = vmul.f32 %v298_v19, %v124_v25  ;;  %v308_v30 = vmul.f32 %v300_v20, %v179_v26 }
 0x115   :  { %v314_v33 = vadd.f32 %v307_v23, %v306_v29  ;;  %v321_v34 = vadd.f32 %v309_v24, %v308_v30  ;;  %v591_v35 = vpop.f32.mrb[2].mxu0  ;;  %v596_v36 = vpop.f32.mrb[2].mxu1 }
 0x116   :  { %v311_v37 = vmul.f32 %v591_v35, %v303_v27  ;;  %v313_v38 = vmul.f32 %v596_v36, %v305_v28  ;;  %v234_v39 = vpop.f32.mrb[3].mxu0  ;;  %v289_v40 = vpop.f32.mrb[3].mxu1 }
 0x117   :  { %v315_v41 = vrot.slane %v314_v33, 4  ;;  %v322_v42 = vrot.slane %v321_v34, 4  ;;  %v310_v43 = vmul.f32 %v302_v31, %v234_v39  ;;  %v312_v44 = vmul.f32 %v304_v32, %v289_v40 }
 0x119   :  { %v316_v45 = vadd.f32 %v315_v41, %v314_v33  ;;  %v323_v46 = vadd.f32 %v322_v42, %v321_v34  ;;  %v328_v47 = vadd.f32 %v311_v37, %v310_v43  ;;  %v335_v48 = vadd.f32 %v313_v38, %v312_v44  ;;  %v383_v49 = vpop.f32.mrb[4].mxu0  ;;  %v424_v50 = vpop.f32.mrb[4].mxu1 }
 0x11a   :  { %v601_v51 = vpop.f32.mrb[5].mxu0  ;;  %v606_v52 = vpop.f32.mrb[5].mxu1 }
 0x11b   :  { %v317_v53 = vrot.slane %v316_v45, 2  ;;  %v324_v54 = vrot.slane %v323_v46, 2  ;;  %v329_v55 = vrot.slane %v328_v47, 4  ;;  %v336_v56 = vrot.slane %v335_v48, 4 }
 0x11d   :  { %v330_v57 = vadd.f32 %v329_v55, %v328_v47  ;;  %v337_v58 = vadd.f32 %v336_v56, %v335_v48  ;;  %v318_v59 = vadd.f32 %v317_v53, %v316_v45  ;;  %v325_v60 = vadd.f32 %v324_v54, %v323_v46  ;;  %v465_v61 = vpop.f32.mrb[6].mxu0  ;;  %v506_v62 = vpop.f32.mrb[6].mxu1 }
 0x11e   :  { %v611_v63 = vpop.f32.mrb[7].mxu0  ;;  %v616_v0 = vpop.f32.mrb[7].mxu1 }
 0x11f   :  { %v331_v1 = vrot.slane %v330_v57, 2  ;;  %v338_v2 = vrot.slane %v337_v58, 2  ;;  %v319_v3 = vrot.slane %v318_v59, 1  ;;  %v326_v4 = vrot.slane %v325_v60, 1 }
 0x121   :  { %v320_v5 = vadd.f32 %v319_v3, %v318_v59  ;;  %v327_v6 = vadd.f32 %v326_v4, %v325_v60  ;;  %v332_v7 = vadd.f32 %v331_v1, %v330_v57  ;;  %v339_v8 = vadd.f32 %v338_v2, %v337_v58 }
 0x123   :  { %v342_v9 = vmul.f32 0.5, %v320_v5  ;;  %v343_v10 = vmul.f32 0.5, %v327_v6  ;;  %v333_v11 = vrot.slane %v332_v7, 1  ;;  %v340_v12 = vrot.slane %v339_v8, 1 }
 0x125   :  { %v384_v13 = vadd.f32 %v383_v49, %v342_v9  ;;  %v425_v14 = vadd.f32 %v424_v50, %v343_v10  ;;  %v334_v15 = vadd.f32 %v333_v11, %v332_v7  ;;  %v341_v16 = vadd.f32 %v340_v12, %v339_v8 }
 0x127   :  { %v514_v17 = vrot.slane %v425_v14, 7  ;;  %v344_v18 = vmul.f32 0.5, %v334_v15  ;;  %v345_v19 = vmul.f32 0.5, %v341_v16 }
 0x129   :  { %v516_v20 = vsel %vm515_vm2, %v514_v17, %v384_v13  ;;  %v466_v21 = vadd.f32 %v465_v61, %v344_v18  ;;  %v507_v22 = vadd.f32 %v506_v62, %v345_v19 }
 0x12b   :  { %v517_v23 = vrot.slane %v466_v21, 6  ;;  %v520_v24 = vrot.slane %v507_v22, 5 }
 0x12d   :  { %v519_v25 = vsel %vm518_vm3, %v517_v23, %v516_v20 }
 0x12e   :  { %v522_v26 = vsel %vm521_vm4, %v520_v24, %v519_v25 }
 0x12f   :  { %524 = vst [vmem:[#allocation8] sm:$0xf] %v522_v26 }
 0x130   :  { %714 = shalt.err (!%p711_p0)
}
 0x131   :  { %s715_s29 = scalar_lea.hbm %s854_s3, 64 }
 0x132   :  { %p716_p1 = scmp.ne.s32.totalorder %s854_s3, %s715_s29  ;;  %p719_p2 = scmp.lt.u32.totalorder %s715_s29, %s854_s3 }
 0x134   :  { %p721_p3 = pnand %p719_p2, %p716_p1 }
 0x136   :  { %724 = shalt.err (!%p721_p3)
}
 0x137   :  { %534 = dma.vmem_to_hbm [thread:$0]  %s532_s25, 64, %s854_s3, [#allocation4]  }
 0x138   :  { %729 = dma.done.wait [#allocation4], 64  }
 0x139   :  { %730 = vsyncadd [#allocation4], 4294967232 }
 0x13a   :  { %538 = vsyncpa [#allocation3], 1 }
 0x13b   :  { %539 = vsyncpa [#allocation6], 1 }
 0x13c   :  { %540 = vsyncpa [#allocation4], 1 }

</bundles_post_ra>
